<compile_context>
chip_gen: v5e
topology: v5e:2x2
jax: 0.10.0
libtpu: 0.0.40
codegen_flags: <defaults>
</compile_context>

<pallas_src>
import jax
import jax.numpy as jnp
from jax.experimental import pallas as pl
from jax.experimental.pallas import tpu as pltpu


def riemann_forward_kernel(x_ref, w1_ref, uout_t_ref, b1_ref, w2_t_ref, b2_ref, o_ref):
    # --- RiemannLayer: folded Tucker-2 linear, 2 MXU passes, no transposes ---
    # t  = x @ (U_in @ core^T)        [TM, r0]      (bf16 in, f32 acc)
    # y1 = t @ U_out^T + b1           [TM, D_out]
    t = jnp.dot(x_ref[...], w1_ref[...], preferred_element_type=jnp.float32)
    y1 = jnp.dot(t.astype(jnp.bfloat16), uout_t_ref[...],
                 preferred_element_type=jnp.float32) + b1_ref[...]

    # --- regular (non-Riemann) tail: ReLU + Linear (element-wise in f32) ---
    h = jnp.maximum(y1, 0.0)
    y2 = jnp.dot(h.astype(jnp.bfloat16), w2_t_ref[...],
                 preferred_element_type=jnp.float32) + b2_ref[...]
    o_ref[...] = y2.astype(o_ref.dtype)


def riemann_model_forward(x, uin, core, uout, b1, w2, b2, *, tm=128):
    """Pallas wrapper.

    x    : [B, D_in]            activations
    uin  : [D_in, r1]  core : [r0, r1]  uout : [D_out, r0]   (RiemannLayer)
    b1   : [D_out]     w2   : [D_final, D_out]   b2 : [D_final]
    """
    B, D_in = x.shape
    D_out = uout.shape[0]
    D_final = w2.shape[0]

    # ---- static, wrapper-side weight prep (free relative to the kernel) ----
    # fold U_in @ core^T, pre-transpose U_out / W2, cast matmul operands to bf16
    w1 = (uin.astype(jnp.float32) @ core.astype(jnp.float32).T).astype(jnp.bfloat16)
    uout_t = uout.T.astype(jnp.bfloat16)          # [r0, D_out]
    w2_t = w2.T.astype(jnp.bfloat16)              # [D_out, D_final]
    x_bf16 = x.astype(jnp.bfloat16)
    b1_2d = b1.reshape(1, D_out).astype(jnp.float32)
    b2_2d = b2.reshape(1, D_final).astype(jnp.float32)
    r0 = w1.shape[1]

    # pad batch so the grid tiles evenly (sliced off on return)
    n_tiles = pl.cdiv(B, tm)
    B_pad = n_tiles * tm
    if B_pad != B:
        x_bf16 = jnp.pad(x_bf16, ((0, B_pad - B), (0, 0)))

    out = pl.pallas_call(
        riemann_forward_kernel,
        out_shape=jax.ShapeDtypeStruct((B_pad, D_final), jnp.float32),
        grid_spec=pltpu.PrefetchScalarGridSpec(
            num_scalar_prefetch=0,
            grid=(n_tiles,),
            in_specs=[
                pl.BlockSpec((tm, D_in), lambda i: (i, 0)),        # x tile (pipelined)
                pl.BlockSpec((D_in, r0), lambda i: (0, 0)),        # U_in @ core^T (resident)
                pl.BlockSpec((r0, D_out), lambda i: (0, 0)),       # U_out^T      (resident)
                pl.BlockSpec((1, D_out), lambda i: (0, 0)),        # b1           (resident)
                pl.BlockSpec((D_out, D_final), lambda i: (0, 0)),  # W2^T         (resident)
                pl.BlockSpec((1, D_final), lambda i: (0, 0)),      # b2           (resident)
            ],
            out_specs=pl.BlockSpec((tm, D_final), lambda i: (i, 0)),
        ),
        compiler_params=pltpu.CompilerParams(
            dimension_semantics=("parallel",),   # shard batch tiles across TCs on v7x
        ),
    )(x_bf16, w1, uout_t, b1_2d, w2_t, b2_2d)
    return out[:B]


def _reference(x, uin, core, uout, b1, w2, b2):
    # Mirrors the kernel's bf16-operand / f32-accumulate arithmetic.
    def bf(a):
        return a.astype(jnp.bfloat16).astype(jnp.float32)
    w1 = bf(uin @ core.T)
    t = bf(x) @ w1
    y1 = bf(t) @ bf(uout.T) + b1
    h = jnp.maximum(y1, 0.0)
    return bf(h) @ bf(w2.T) + b2


if __name__ == "__main__":
    key = jax.random.PRNGKey(0)
    # lane-dense, TPU-friendly small shapes (feature dims multiples of 128)
    B, D_in, D_out, D_final = 256, 128, 128, 128
    rank = (16, 16)

    k = jax.random.split(key, 7)
    x    = jax.random.normal(k[0], (B, D_in), dtype=jnp.float32)
    # Riemann parameters (core + factors)
    core = jax.random.normal(k[1], rank, dtype=jnp.float32) * 0.1
    uout = jax.random.normal(k[2], (D_out, rank[0]), dtype=jnp.float32) * 0.1
    uin  = jax.random.normal(k[3], (D_in, rank[1]), dtype=jnp.float32) * 0.1
    b1   = jax.random.normal(k[4], (D_out,), dtype=jnp.float32) * 0.1
    # Regular parameters (ordinary Linear)
    w2   = jax.random.normal(k[5], (D_final, D_out), dtype=jnp.float32) * 0.1
    b2   = jax.random.normal(k[6], (D_final,), dtype=jnp.float32) * 0.1

    out = riemann_model_forward(x, uin, core, uout, b1, w2, b2)
    out = jax.block_until_ready(out)

    ref = _reference(x, uin, core, uout, b1, w2, b2)
    assert out.shape == (B, D_final)
    assert jnp.allclose(out, ref, atol=2e-3, rtol=2e-3), "mismatch vs reference"

    print("KERNEL_OK")
</pallas_src>

<mosaic_0001>
module attributes {stable_mosaic.version = 11 : i64} {
  func.func @riemann_forward_kernel(%arg0: i32, %arg1: memref<128x128xbf16, #tpu.memory_space<vmem>>, %arg2: memref<128x16xbf16, #tpu.memory_space<vmem>>, %arg3: memref<16x128xbf16, #tpu.memory_space<vmem>>, %arg4: memref<1x128xf32, #tpu.memory_space<vmem>>, %arg5: memref<128x128xbf16, #tpu.memory_space<vmem>>, %arg6: memref<1x128xf32, #tpu.memory_space<vmem>>, %arg7: memref<128x128xf32, #tpu.memory_space<vmem>>) attributes {dimension_semantics = [#tpu.dimension_semantics<parallel>], iteration_bounds = array<i64: 2>, scalar_prefetch = 0 : i64, scratch_operands = 0 : i64, tpu.core_type = #tpu.core_type<tc>, window_params = [{transform_indices = @transform_0, window_bounds = array<i64: 128, 128>}, {pipeline_mode = #tpu.pipeline_mode<synchronous>, transform_indices = @transform_1, window_bounds = array<i64: 128, 16>}, {pipeline_mode = #tpu.pipeline_mode<synchronous>, transform_indices = @transform_2, window_bounds = array<i64: 16, 128>}, {pipeline_mode = #tpu.pipeline_mode<synchronous>, transform_indices = @transform_3, window_bounds = array<i64: 1, 128>}, {pipeline_mode = #tpu.pipeline_mode<synchronous>, transform_indices = @transform_4, window_bounds = array<i64: 128, 128>}, {pipeline_mode = #tpu.pipeline_mode<synchronous>, transform_indices = @transform_5, window_bounds = array<i64: 1, 128>}, {transform_indices = @transform_6, window_bounds = array<i64: 128, 128>}]} {
    %c0 = arith.constant 0 : index
    %c0_0 = arith.constant 0 : index
    %0 = vector.load %arg1[%c0, %c0_0] : memref<128x128xbf16, #tpu.memory_space<vmem>>, vector<128x128xbf16>
    %c0_1 = arith.constant 0 : index
    %c0_2 = arith.constant 0 : index
    %1 = vector.load %arg2[%c0_1, %c0_2] : memref<128x16xbf16, #tpu.memory_space<vmem>>, vector<128x16xbf16>
    %cst = arith.constant dense<0.000000e+00> : vector<128x16xf32>
    %2 = tpu.matmul %0, %1, %cst {dimension_numbers = #tpu.dot_dimension_numbers<[1], [0], [0], [1], [0, 0, 1, 1], [], []>} : vector<128x128xbf16>, vector<128x16xbf16>, vector<128x16xf32> -> vector<128x16xf32>
    %3 = arith.truncf %2 : vector<128x16xf32> to vector<128x16xbf16>
    %c0_3 = arith.constant 0 : index
    %c0_4 = arith.constant 0 : index
    %4 = vector.load %arg3[%c0_3, %c0_4] : memref<16x128xbf16, #tpu.memory_space<vmem>>, vector<16x128xbf16>
    %cst_5 = arith.constant dense<0.000000e+00> : vector<128x128xf32>
    %5 = tpu.matmul %3, %4, %cst_5 {dimension_numbers = #tpu.dot_dimension_numbers<[1], [0], [0], [1], [0, 0, 1, 1], [], []>} : vector<128x16xbf16>, vector<16x128xbf16>, vector<128x128xf32> -> vector<128x128xf32>
    %c0_6 = arith.constant 0 : index
    %c0_7 = arith.constant 0 : index
    %6 = vector.load %arg4[%c0_6, %c0_7] : memref<1x128xf32, #tpu.memory_space<vmem>>, vector<1x128xf32>
    %7 = vector.broadcast %6 : vector<1x128xf32> to vector<128x128xf32>
    %8 = arith.addf %5, %7 : vector<128x128xf32>
    %cst_8 = arith.constant 0.000000e+00 : f32
    %9 = vector.broadcast %cst_8 : f32 to vector<128x128xf32>
    %10 = arith.maximumf %8, %9 : vector<128x128xf32>
    %11 = arith.truncf %10 : vector<128x128xf32> to vector<128x128xbf16>
    %c0_9 = arith.constant 0 : index
    %c0_10 = arith.constant 0 : index
    %12 = vector.load %arg5[%c0_9, %c0_10] : memref<128x128xbf16, #tpu.memory_space<vmem>>, vector<128x128xbf16>
    %cst_11 = arith.constant dense<0.000000e+00> : vector<128x128xf32>
    %13 = tpu.matmul %11, %12, %cst_11 {dimension_numbers = #tpu.dot_dimension_numbers<[1], [0], [0], [1], [0, 0, 1, 1], [], []>} : vector<128x128xbf16>, vector<128x128xbf16>, vector<128x128xf32> -> vector<128x128xf32>
    %c0_12 = arith.constant 0 : index
    %c0_13 = arith.constant 0 : index
    %14 = vector.load %arg6[%c0_12, %c0_13] : memref<1x128xf32, #tpu.memory_space<vmem>>, vector<1x128xf32>
    %15 = vector.broadcast %14 : vector<1x128xf32> to vector<128x128xf32>
    %16 = arith.addf %13, %15 : vector<128x128xf32>
    %c0_14 = arith.constant 0 : index
    %c0_15 = arith.constant 0 : index
    %17 = vector.load %arg7[%c0_14, %c0_15] : memref<128x128xf32, #tpu.memory_space<vmem>>, vector<128x128xf32>
    tpu.vector_store %arg7[%c0_14, %c0_15], %16 {strides = array<i32>} : memref<128x128xf32, #tpu.memory_space<vmem>>, vector<128x128xf32>,
    return
  }
  func.func @transform_0(%arg0: i32) -> (i32, i32) {
    %c0_i32 = arith.constant 0 : i32
    %c0_i32_0 = arith.constant 0 : i32
    return %arg0, %c0_i32 : i32, i32
  }
  func.func @transform_1(%arg0: i32) -> (i32, i32) {
    %c0_i32 = arith.constant 0 : i32
    %c0_i32_0 = arith.constant 0 : i32
    %c0_i32_1 = arith.constant 0 : i32
    return %c0_i32, %c0_i32_0 : i32, i32
  }
  func.func @transform_2(%arg0: i32) -> (i32, i32) {
    %c0_i32 = arith.constant 0 : i32
    %c0_i32_0 = arith.constant 0 : i32
    %c0_i32_1 = arith.constant 0 : i32
    return %c0_i32, %c0_i32_0 : i32, i32
  }
  func.func @transform_3(%arg0: i32) -> (i32, i32) {
    %c0_i32 = arith.constant 0 : i32
    %c0_i32_0 = arith.constant 0 : i32
    %c0_i32_1 = arith.constant 0 : i32
    return %c0_i32, %c0_i32_0 : i32, i32
  }
  func.func @transform_4(%arg0: i32) -> (i32, i32) {
    %c0_i32 = arith.constant 0 : i32
    %c0_i32_0 = arith.constant 0 : i32
    %c0_i32_1 = arith.constant 0 : i32
    return %c0_i32, %c0_i32_0 : i32, i32
  }
  func.func @transform_5(%arg0: i32) -> (i32, i32) {
    %c0_i32 = arith.constant 0 : i32
    %c0_i32_0 = arith.constant 0 : i32
    %c0_i32_1 = arith.constant 0 : i32
    return %c0_i32, %c0_i32_0 : i32, i32
  }
  func.func @transform_6(%arg0: i32) -> (i32, i32) {
    %c0_i32 = arith.constant 0 : i32
    %c0_i32_0 = arith.constant 0 : i32
    return %arg0, %c0_i32 : i32, i32
  }
}

</mosaic_0001>

<bundles_post_ra>
// kernel: tpu_custom_call.1
= control target key start
LH: loop header
LB: loop body
LE: loop exit
PB: predicated region body
PF: predicated region fallthrough
CT: control target
= control target key end

     0   :  { %11 = vsyncpa [#allocation3], 0  ;;  %s1368_s0 = inlined_call_operand.hbm [shape: bf16[256,128], index: 0, kind: input, shape index: {}]   ;;  %s1369_s1 = inlined_call_operand.vmem [shape: bf16[128,16], index: 1, kind: input, shape index: {}]   ;;  %s1370_s2 = inlined_call_operand.vmem [shape: bf16[16,128], index: 2, kind: input, shape index: {}]   ;;  %s1371_s3 = inlined_call_operand.vmem [shape: f32[1,128], index: 3, kind: input, shape index: {}]   ;;  %s1372_s4 = inlined_call_operand.vmem [shape: bf16[128,128], index: 4, kind: input, shape index: {}]   ;;  %s1373_s5 = inlined_call_operand.vmem [shape: f32[1,128], index: 5, kind: input, shape index: {}]   ;;  %s1374_s6 = inlined_call_operand.hbm [shape: f32[256,128], index: 6, kind: output, shape index: {}]  }
   0x1   :  { %13 = vsyncpa [#allocation3 + $0x1], 0 }
   0x2   :  { %14 = vsyncpa [#allocation4], 0 }
   0x3   :  { %16 = vsyncpa [#allocation4 + $0x1], 0  ;;  %s1146_s21 = smov 0   ;;  %s1148_s22 = smov 0  }
   0x4   :  { %s1150_s23 = smov 0   ;;  %s1152_s24 = smov 0  }
   0x5 LB: > { %s1167_s25 = sadd.s32 4294967295, %s1105_s24   ;;  %s792_s26 = sadd.s32 4294967294, %s1105_s24   ;;  %s1105_s24 = sphi %s1152_s24, %s1384_s24   ;;  %s1101_s23 = sphi %s1150_s23, %s1383_s23   ;;  %s1097_s22 = sphi %s1148_s22, %s1382_s22   ;;  %s1093_s21 = sphi %s1146_s21, %s1381_s21  }
   0x6   : > { %s1171_s27 = sadd.s32 1, %s1105_s24   ;;  %s29_s28 = sadd.s32 1, %s1101_s23 }
   0x7   : > { %s26_s29 = ssub.s32 %s1105_s24, %s1171_s27  ;;  %p36_p0 = scmp.ne.s32.totalorder %s1101_s23, %s1097_s22 }
   0x8   : > { %p27_p1 = scmp.eq.s32.totalorder %s26_s29, 0  ;;  %p37_p2 = scmp.eq.s32.totalorder %s1105_s24, 0 }
   0x9   : > { %p42_p3 = scmp.ne.s32.totalorder %s1097_s22, %s1093_s21  ;;  %p43_p4 = scmp.eq.s32.totalorder %s1167_s25, 0 }
   0xa   : > { %s1183_s30 = scalar_select %p27_p1, %s1101_s23, %s29_s28  }
   0xb   : > { %p1185_p5 = por %p37_p2, %p36_p0  ;;  %p1189_p6 = por %p43_p4, %p42_p3 }
   0xc   : > { %p171_p7 = scmp.eq.s32.totalorder %s1167_s25, 1  ;;  %p177_p8 = scmp.eq.s32.totalorder %s792_s26, 1 }
   0xd   : > { %p969_p10 = scmp.lt.s32.totalorder %s1105_s24, 2  ;;  %s212_s11 = sand.u32 1, %s1101_s23  }
   0xe   : > { %p1196_p11 = por %p171_p7, %p36_p0  ;;  %p1200_p12 = por %p177_p8, %p42_p3 }
   0xf   : > { %s914_s12 = sshll.u32 %s1105_s24, 6  ;;  %s795_s13 = sshll.u32 %s212_s11, 6 }
  0x10   : > { %s221_s16 = scalar_lea.hbm %s1368_s0, %s914_s12  ;;  %s216_s18 = scalar_lea.vmem [#allocation2], %s795_s13 }
  0x11   : > { %s222_s17 = sshll.u32 %s221_s16, 4  ;;  %s224_s19 = sshll.u32 %s216_s18, 4  ;;  %s223_s17 = int_to_ptr.hbm [resolvable:$true] %s222_s17  ;;  %s225_s19 = int_to_ptr.vmem [resolvable:$true] %s224_s19 }
  0x12   : > { %p1211_p13 = pnand %p969_p10, %p1185_p5  ;;  %p798_p0 = scmp.ge.s32.totalorder %s1105_s24, 1 }
  0x13   : > { %p232_p1 = scmp.lt.s32.totalorder %s1105_s24, 3  ;;  %s213_s26 = scalar_lea.sflag [#allocation3], %s212_s11 }
  0x14   : > { %s1009_s28 = sshra.s32 %s223_s17, 4  ;;  %p1013_p3 = pneg %p1211_p13  ;;  %s1010_s28 = int_to_ptr.hbm [resolvable:$true] %s1009_s28 }
  0x15   : > { %s1011_s29 = scalar_lea.hbm %s1010_s28, 64  ;;  %s1016_s7 = scalar_lea.hbm %s1368_s0, 128 }
  0x16   : > { %p1012_p2 = scmp.ne.s32.totalorder %s1010_s28, %s1011_s29  ;;  %p1017_p5 = scmp.lt.s32.totalorder %s1010_s28, %s1368_s0 }
  0x17   : > { %p1018_p8 = scmp.lt.s32.totalorder %s1016_s7, %s1011_s29 }
  0x18   : > { %p1014_p4 = pnand %p1013_p3, %p1012_p2 }
  0x19   : > { %p1019_p10 = por %p1018_p8, %p1017_p5 }
  0x1a   : > { %p1015_p7 = pneg %p1014_p4 }
  0x1c   : > { %p1020_p9 = pnand %p1019_p10, %p1015_p7 }
  0x1e   : > { %1023 = shalt.err (!%p1020_p9)
}
  0x1f   : > { %s1107_s11 = smov 64   ;;  %s1108_s16 = smov 4  }
  0x20   : > { %964 = dma.hbm_to_vmem [thread:$0]  (!%p1211_p13), %s223_s17, 1024, %s225_s19, %s213_s26, %s1107_s11, %s1107_s11, %s1108_s16  }
  0x21   : > { %p233_p2 = pnand %p798_p0, %p232_p1 }
  0x22   : > { %s1232_s18 = sand.u32 (!%p233_p2), 1, %s1097_s22  }
  0x23   : > { %236 = sbr.rel (%p233_p2) target bundleno = 607 (0x25f), region = 44  ;;  %s799_s28 = sshll.u32 (!%p233_p2), %s1232_s18, 6 }
  0x24   : > { %s239_s29 = scalar_lea.sflag (!%p233_p2), [#allocation3], %s1232_s18  ;;  %s1236_s12 = scalar_lea.vmem (!%p233_p2), [#allocation2], %s799_s28 }
  0x28   : > { %1084 = dma.done.wait (%p1189_p6), %s239_s29, 1024  }
  0x29   : > { %1086 = vsyncadd (%p1189_p6), %s239_s29, 4294966272  ;;  %v930_v0 = vld [vmem:[%s1369_s1 + $0x38] sm:$0xff]  ;;  %v929_v1 = vld [vmem:[%s1369_s1 + $0x30] sm:$0xff]  ;;  %vm472_vm0 = vcmask 130048   ;;  %s800_s15 = sshll.u32 %s1232_s18, 7  ;;  %s940_s29 = sshll.u32 %s1167_s25, 7 }
  0x2a   : > { %403 = vmatpush.bf16.msra.mxu0 %v930_v0  ;;  %941 = vmatpush.bf16.msra.mxu3 %v930_v0  ;;  %v928_v2 = vld [vmem:[%s1369_s1 + $0x28] sm:$0xff]  ;;  %v927_v3 = vld [vmem:[%s1369_s1 + $0x20] sm:$0xff]  ;;  %v926_v4 = vld [vmem:[%s1369_s1 + $0x18] sm:$0xff]  ;;  %s1316_s28 = scalar_lea.vmem [#allocation5], %s800_s15  ;;  %s715_s20 = scalar_lea.hbm %s1374_s6, %s940_s29 }
  0x2b   : > { %v925_v5 = vld [vmem:[%s1369_s1 + $0x10] sm:$0xff]  ;;  %v924_v6 = vld [vmem:[%s1369_s1 + $0x8] sm:$0xff]  ;;  %v923_v7 = vld [vmem:[%s1369_s1] sm:$0xff]  ;;  %s716_s26 = sshll.u32 %s1316_s28, 4  ;;  %s718_s13 = sshll.u32 %s715_s20, 4  ;;  %s717_s26 = int_to_ptr.vmem [resolvable:$true] %s716_s26  ;;  %s719_s13 = int_to_ptr.hbm [resolvable:$true] %s718_s13 }
  0x2c   : > { %v915_v8 = vld [vmem:[%s1236_s12] sm:$0xff]  ;;  %v916_v9 = vld [vmem:[%s1236_s12 + $0x8] sm:$0xff]  ;;  %v917_v10 = vld [vmem:[%s1236_s12 + $0x10] sm:$0xff]  ;;  %s1053_s7 = sshra.s32 %s719_s13, 4  ;;  %s1059_s15 = scalar_lea.hbm %s1374_s6, 256  ;;  %s1054_s7 = int_to_ptr.hbm [resolvable:$true] %s1053_s7 }
  0x2d   : > { %v918_v11 = vld [vmem:[%s1236_s12 + $0x18] sm:$0xff]  ;;  %v921_v12 = vld [vmem:[%s1236_s12 + $0x30] sm:$0xff]  ;;  %v919_v13 = vld [vmem:[%s1236_s12 + $0x20] sm:$0xff]  ;;  %s1055_s8 = scalar_lea.hbm %s1054_s7, 128  ;;  %p1060_p0 = scmp.lt.s32.totalorder %s1054_s7, %s1374_s6 }
  0x2e   : > { %404 = vmatpush.bf16.msra.mxu0 %v929_v1  ;;  %942 = vmatpush.bf16.msra.mxu3 %v929_v1  ;;  %v922_v14 = vld [vmem:[%s1236_s12 + $0x38] sm:$0xff]  ;;  %v920_v15 = vld [vmem:[%s1236_s12 + $0x28] sm:$0xff]  ;;  %v931_v16 = vld [vmem:[%s1370_s2] sm:$0xff]  ;;  %s704_s12 = scalar_lea.sflag [#allocation4], %s1232_s18  ;;  %p1056_p6 = scmp.ne.s32.totalorder %s1054_s7, %s1055_s8 }
  0x2f   : > { %504 = vmatpush.bf16.msra.mxu1 %v931_v16  ;;  %v939_v32 = vld [vmem:[%s1372_s4 + $0x38] sm:$0xff]  ;;  %v938_v37 = vld [vmem:[%s1372_s4 + $0x30] sm:$0xff]  ;;  %v937_v38 = vld [vmem:[%s1372_s4 + $0x28] sm:$0xff]  ;;  %p1061_p1 = scmp.lt.s32.totalorder %s1059_s15, %s1055_s8 }
  0x30   : > { %638 = vmatpush.bf16.msra.mxu2 %v939_v32  ;;  %v936_v39 = vld [vmem:[%s1372_s4 + $0x20] sm:$0xff]  ;;  %v935_v41 = vld [vmem:[%s1372_s4 + $0x18] sm:$0xff]  ;;  %v934_v43 = vld [vmem:[%s1372_s4 + $0x10] sm:$0xff]  ;;  %p1057_p9 = pnand %p1056_p6, %p1196_p11 }
  0x31   : > { %v933_v45 = vld [vmem:[%s1372_s4 + $0x8] sm:$0xff]  ;;  %v932_v46 = vld [vmem:[%s1372_s4] sm:$0xff]  ;;  %p1062_p3 = por %p1061_p1, %p1060_p0 }
  0x32   : > { %405 = vmatpush.bf16.msra.mxu0 %v928_v2  ;;  %943 = vmatpush.bf16.msra.mxu3 %v928_v2  ;;  %v1007_v50 = vld [vmem:[%s1371_s3] ss:$0 sm:$0xff]  ;;  %p1058_p13 = pneg %p1057_p9 }
  0x34   : > { %639 = vmatpush.bf16.msra.mxu2 %v938_v37  ;;  %p1063_p4 = pnand %p1062_p3, %p1058_p13 }
  0x36   : > { %406 = vmatpush.bf16.msra.mxu0 %v927_v3  ;;  %944 = vmatpush.bf16.msra.mxu3 %v927_v3 }
  0x38   : > { %640 = vmatpush.bf16.msra.mxu2 %v937_v38 }
  0x3a   : > { %407 = vmatpush.bf16.msra.mxu0 %v926_v4  ;;  %945 = vmatpush.bf16.msra.mxu3 %v926_v4 }
  0x3c   : > { %641 = vmatpush.bf16.msra.mxu2 %v936_v39 }
  0x3e   : > { %408 = vmatpush.bf16.msra.mxu0 %v925_v5  ;;  %946 = vmatpush.bf16.msra.mxu3 %v925_v5 }
  0x40   : > { %642 = vmatpush.bf16.msra.mxu2 %v935_v41 }
  0x42   : > { %409 = vmatpush.bf16.msra.mxu0 %v924_v6  ;;  %947 = vmatpush.bf16.msra.mxu3 %v924_v6 }
  0x44   : > { %643 = vmatpush.bf16.msra.mxu2 %v934_v43 }
  0x46   : > { %410 = vmatpush.bf16.msra.mxu0 %v923_v7  ;;  %948 = vmatpush.bf16.msra.mxu3 %v923_v7 }
  0x48   : > { %644 = vmatpush.bf16.msra.mxu2 %v933_v45 }
  0x49   : > { %411 = vmatmul.bf16.vlgmr.msra.gmra.mxu0 %v915_v8  ;;  %441 = vmatmul.bf16.vlgmr.msra.gmra.mxu3 %v921_v12 }
  0x4a   : > { %949 = vmatpush.bf16.msrb.mxu3 %v939_v32 }
  0x4c   : > { %645 = vmatpush.bf16.msra.mxu2 %v932_v46 }
  0x4e   : > { %950 = vmatpush.bf16.msrb.mxu3 %v938_v37 }
  0x52   : > { %951 = vmatpush.bf16.msrb.mxu3 %v937_v38 }
  0x56   : > { %952 = vmatpush.bf16.msrb.mxu3 %v936_v39 }
  0x59   : > { %416 = vmatmul.bf16.gmra.mxu0 %v916_v9  ;;  %446 = vmatmul.bf16.gmra.mxu3 %v922_v14 }
  0x5a   : > { %953 = vmatpush.bf16.msrb.mxu3 %v935_v41 }
  0x5e   : > { %954 = vmatpush.bf16.msrb.mxu3 %v934_v43 }
  0x62   : > { %955 = vmatpush.bf16.msrb.mxu3 %v933_v45 }
  0x66   : > { %956 = vmatpush.bf16.msrb.mxu3 %v932_v46 }
  0x69   : > { %421 = vmatmul.bf16.gmra.mxu0 %v917_v10 }
  0x79   : > { %426 = vmatmul.bf16.gmra.mxu0 %v918_v11 }
  0x89   : > { %431 = vmatmul.bf16.gmra.mxu0 %v919_v13 }
  0x99   : > { %436 = vmatmul.bf16.gmra.mxu0 %v920_v15 }
  0xc6   : > { %v412_v17 = vpop.f32.mrf.mxu0 }
  0xcc   : > { %v442_v35 = vpop.f32.mrf.mxu3 }
  0xce   : > { %v414_v18 = vpop.f32.mrf.mxu0 }
  0xcf   : > { %v452_v19 = vpack.c.bf16 %v414_v18, %v412_v17 }
  0xd1   : > { %869 = vmatmul.msk.bf16.vlgmr.msra.gmra.mxu1 %vm472_vm0, %v452_v19 }
  0xd4   : > { %v444_v40 = vpop.f32.mrf.mxu3 }
  0xd5   : > { %v458_v42 = vpack.c.bf16 %v444_v40, %v442_v35 }
  0xd6   : > { %v417_v20 = vpop.f32.mrf.mxu0 }
  0xdc   : > { %v447_v44 = vpop.f32.mrf.mxu3 }
  0xde   : > { %v419_v21 = vpop.f32.mrf.mxu0 }
  0xdf   : > { %v453_v22 = vpack.c.bf16 %v419_v21, %v417_v20 }
  0xe1   : > { %870 = vmatmul.msk.bf16.gmra.mxu1 %vm472_vm0, %v453_v22 }
  0xe4   : > { %v449_v47 = vpop.f32.mrf.mxu3 }
  0xe5   : > { %v459_v48 = vpack.c.bf16 %v449_v47, %v447_v44 }
  0xe6   : > { %v422_v23 = vpop.f32.mrf.mxu0 }
  0xee   : > { %v424_v24 = vpop.f32.mrf.mxu0 }
  0xef   : > { %v454_v25 = vpack.c.bf16 %v424_v24, %v422_v23 }
  0xf1   : > { %871 = vmatmul.msk.bf16.gmra.mxu1 %vm472_vm0, %v454_v25 }
  0xf6   : > { %v427_v26 = vpop.f32.mrf.mxu0 }
  0xfe   : > { %v429_v27 = vpop.f32.mrf.mxu0 }
  0xff   : > { %v455_v28 = vpack.c.bf16 %v429_v27, %v427_v26 }
 0x101   : > { %872 = vmatmul.msk.bf16.gmra.mxu1 %vm472_vm0, %v455_v28 }
 0x106   : > { %v432_v29 = vpop.f32.mrf.mxu0 }
 0x10e   : > { %v434_v30 = vpop.f32.mrf.mxu0 }
 0x10f   : > { %v456_v31 = vpack.c.bf16 %v434_v30, %v432_v29 }
 0x111   : > { %873 = vmatmul.msk.bf16.gmra.mxu1 %vm472_vm0, %v456_v31 }
 0x116   : > { %v437_v33 = vpop.f32.mrf.mxu0 }
 0x11e   : > { %v439_v34 = vpop.f32.mrf.mxu0 }
 0x11f   : > { %v457_v36 = vpack.c.bf16 %v439_v34, %v437_v33 }
 0x121   : > { %874 = vmatmul.msk.bf16.gmra.mxu1 %vm472_vm0, %v457_v36 }
 0x131   : > { %875 = vmatmul.msk.bf16.gmra.mxu1 %vm472_vm0, %v458_v42  ;;  %v1008_v42 = vld [vmem:[%s1373_s5] ss:$0 sm:$0xff] }
 0x141   : > { %876 = vmatmul.msk.bf16.gmra.mxu1 %vm472_vm0, %v459_v48 }
 0x14e   : > { %v506_v49 = vpop.f32.mrf.mxu1 }
 0x14f   : > { %v507_v51 = vadd.f32 %v1007_v50, %v506_v49 }
 0x151   : > { %v546_v54 = vmax.f32 %v507_v51, 0.0 }
 0x156   : > { %v508_v52 = vpop.f32.mrf.mxu1 }
 0x157   : > { %v509_v53 = vadd.f32 %v1007_v50, %v508_v52 }
 0x159   : > { %v547_v55 = vmax.f32 %v509_v53, 0.0 }
 0x15b   : > { %v562_v56 = vpack.c.bf16 %v547_v55, %v546_v54 }
 0x15d   : > { %646 = vmatmul.bf16.vlgmr.msra.gmra.mxu2 %v562_v56 }
 0x15e   : > { %v511_v57 = vpop.f32.mrf.mxu1 }
 0x15f   : > { %v512_v58 = vadd.f32 %v1007_v50, %v511_v57 }
 0x161   : > { %v548_v61 = vmax.f32 %v512_v58, 0.0 }
 0x166   : > { %v513_v59 = vpop.f32.mrf.mxu1 }
 0x167   : > { %v514_v60 = vadd.f32 %v1007_v50, %v513_v59 }
 0x169   : > { %v549_v62 = vmax.f32 %v514_v60, 0.0 }
 0x16b   : > { %v563_v63 = vpack.c.bf16 %v549_v62, %v548_v61 }
 0x16d   : > { %651 = vmatmul.bf16.gmra.mxu2 %v563_v63 }
 0x16e   : > { %v516_v0 = vpop.f32.mrf.mxu1 }
 0x16f   : > { %v517_v1 = vadd.f32 %v1007_v50, %v516_v0 }
 0x171   : > { %v550_v4 = vmax.f32 %v517_v1, 0.0 }
 0x176   : > { %v518_v2 = vpop.f32.mrf.mxu1 }
 0x177   : > { %v519_v3 = vadd.f32 %v1007_v50, %v518_v2 }
 0x179   : > { %v551_v5 = vmax.f32 %v519_v3, 0.0 }
 0x17b   : > { %v564_v6 = vpack.c.bf16 %v551_v5, %v550_v4 }
 0x17d   : > { %656 = vmatmul.bf16.gmra.mxu2 %v564_v6 }
 0x17e   : > { %v521_v7 = vpop.f32.mrf.mxu1 }
 0x17f   : > { %v522_v8 = vadd.f32 %v1007_v50, %v521_v7 }
 0x181   : > { %v552_v11 = vmax.f32 %v522_v8, 0.0 }
 0x186   : > { %v523_v9 = vpop.f32.mrf.mxu1 }
 0x187   : > { %v524_v10 = vadd.f32 %v1007_v50, %v523_v9 }
 0x189   : > { %v553_v12 = vmax.f32 %v524_v10, 0.0 }
 0x18b   : > { %v565_v13 = vpack.c.bf16 %v553_v12, %v552_v11 }
 0x18d   : > { %661 = vmatmul.bf16.gmra.mxu2 %v565_v13 }
 0x18e   : > { %v526_v14 = vpop.f32.mrf.mxu1 }
 0x18f   : > { %v527_v15 = vadd.f32 %v1007_v50, %v526_v14 }
 0x191   : > { %v554_v18 = vmax.f32 %v527_v15, 0.0 }
 0x196   : > { %v528_v16 = vpop.f32.mrf.mxu1 }
 0x197   : > { %v529_v17 = vadd.f32 %v1007_v50, %v528_v16 }
 0x199   : > { %v555_v19 = vmax.f32 %v529_v17, 0.0 }
 0x19b   : > { %v566_v20 = vpack.c.bf16 %v555_v19, %v554_v18 }
 0x19d   : > { %666 = vmatmul.bf16.gmra.mxu2 %v566_v20 }
 0x19e   : > { %v531_v21 = vpop.f32.mrf.mxu1 }
 0x19f   : > { %v532_v22 = vadd.f32 %v1007_v50, %v531_v21 }
 0x1a1   : > { %v556_v25 = vmax.f32 %v532_v22, 0.0 }
 0x1a6   : > { %v533_v23 = vpop.f32.mrf.mxu1 }
 0x1a7   : > { %v534_v24 = vadd.f32 %v1007_v50, %v533_v23 }
 0x1a9   : > { %v557_v26 = vmax.f32 %v534_v24, 0.0 }
 0x1ab   : > { %v567_v27 = vpack.c.bf16 %v557_v26, %v556_v25 }
 0x1ad   : > { %671 = vmatmul.bf16.gmra.mxu2 %v567_v27 }
 0x1ae   : > { %v536_v28 = vpop.f32.mrf.mxu1 }
 0x1af   : > { %v537_v29 = vadd.f32 %v1007_v50, %v536_v28 }
 0x1b1   : > { %v558_v32 = vmax.f32 %v537_v29, 0.0 }
 0x1b6   : > { %v538_v30 = vpop.f32.mrf.mxu1 }
 0x1b7   : > { %v539_v31 = vadd.f32 %v1007_v50, %v538_v30 }
 0x1b9   : > { %v559_v33 = vmax.f32 %v539_v31, 0.0 }
 0x1bb   : > { %v568_v34 = vpack.c.bf16 %v559_v33, %v558_v32 }
 0x1bd   : > { %676 = vmatmul.bf16.vlgmr.msrb.gmra.mxu3 %v568_v34 }
 0x1be   : > { %v541_v35 = vpop.f32.mrf.mxu1 }
 0x1bf   : > { %v542_v36 = vadd.f32 %v1007_v50, %v541_v35 }
 0x1c1   : > { %v560_v39 = vmax.f32 %v542_v36, 0.0 }
 0x1c6   : > { %v543_v37 = vpop.f32.mrf.mxu1 }
 0x1c7   : > { %v544_v38 = vadd.f32 %v1007_v50, %v543_v37 }
 0x1c9   : > { %v561_v40 = vmax.f32 %v544_v38, 0.0 }
 0x1cb   : > { %v569_v41 = vpack.c.bf16 %v561_v40, %v560_v39 }
 0x1cd   : > { %681 = vmatmul.bf16.gmra.mxu3 %v569_v41 }
 0x1e0   : > { %v647_v43 = vpop.f32.mrf.mxu2 }
 0x1e1   : > { %v648_v44 = vadd.f32 %v1008_v42, %v647_v43 }
 0x1e3   : > { %687 = vst [vmem:[%s1316_s28] sm:$0xff] %v648_v44 }
 0x1e8   : > { %v649_v45 = vpop.f32.mrf.mxu2 }
 0x1e9   : > { %v650_v46 = vadd.f32 %v1008_v42, %v649_v45 }
 0x1eb   : > { %688 = vst [vmem:[%s1316_s28 + $0x8] sm:$0xff] %v650_v46 }
 0x1f0   : > { %v652_v47 = vpop.f32.mrf.mxu2 }
 0x1f1   : > { %v653_v48 = vadd.f32 %v1008_v42, %v652_v47 }
 0x1f3   : > { %689 = vst [vmem:[%s1316_s28 + $0x10] sm:$0xff] %v653_v48 }
 0x1f8   : > { %v654_v49 = vpop.f32.mrf.mxu2 }
 0x1f9   : > { %v655_v50 = vadd.f32 %v1008_v42, %v654_v49 }
 0x1fb   : > { %690 = vst [vmem:[%s1316_s28 + $0x18] sm:$0xff] %v655_v50 }
 0x200   : > { %v657_v51 = vpop.f32.mrf.mxu2 }
 0x201   : > { %v658_v52 = vadd.f32 %v1008_v42, %v657_v51 }
 0x203   : > { %691 = vst [vmem:[%s1316_s28 + $0x20] sm:$0xff] %v658_v52 }
 0x208   : > { %v659_v53 = vpop.f32.mrf.mxu2 }
 0x209   : > { %v660_v54 = vadd.f32 %v1008_v42, %v659_v53 }
 0x20b   : > { %692 = vst [vmem:[%s1316_s28 + $0x28] sm:$0xff] %v660_v54 }
 0x210   : > { %v662_v55 = vpop.f32.mrf.mxu2 }
 0x211   : > { %v663_v56 = vadd.f32 %v1008_v42, %v662_v55 }
 0x213   : > { %693 = vst [vmem:[%s1316_s28 + $0x30] sm:$0xff] %v663_v56 }
 0x218   : > { %v664_v57 = vpop.f32.mrf.mxu2 }
 0x219   : > { %v665_v58 = vadd.f32 %v1008_v42, %v664_v57 }
 0x21b   : > { %694 = vst [vmem:[%s1316_s28 + $0x38] sm:$0xff] %v665_v58 }
 0x220   : > { %v667_v59 = vpop.f32.mrf.mxu2 }
 0x221   : > { %v668_v60 = vadd.f32 %v1008_v42, %v667_v59 }
 0x223   : > { %695 = vst [vmem:[%s1316_s28 + $0x40] sm:$0xff] %v668_v60 }
 0x228   : > { %v669_v61 = vpop.f32.mrf.mxu2 }
 0x229   : > { %v670_v62 = vadd.f32 %v1008_v42, %v669_v61 }
 0x22b   : > { %696 = vst [vmem:[%s1316_s28 + $0x48] sm:$0xff] %v670_v62 }
 0x230   : > { %v672_v63 = vpop.f32.mrf.mxu2 }
 0x231   : > { %v673_v0 = vadd.f32 %v1008_v42, %v672_v63 }
 0x233   : > { %697 = vst [vmem:[%s1316_s28 + $0x50] sm:$0xff] %v673_v0 }
 0x238   : > { %v674_v1 = vpop.f32.mrf.mxu2 }
 0x239   : > { %v675_v2 = vadd.f32 %v1008_v42, %v674_v1 }
 0x23b   : > { %698 = vst [vmem:[%s1316_s28 + $0x58] sm:$0xff] %v675_v2 }
 0x240   : > { %v677_v3 = vpop.f32.mrf.mxu3 }
 0x241   : > { %v678_v4 = vadd.f32 %v1008_v42, %v677_v3 }
 0x243   : > { %699 = vst [vmem:[%s1316_s28 + $0x60] sm:$0xff] %v678_v4 }
 0x248   : > { %v679_v5 = vpop.f32.mrf.mxu3 }
 0x249   : > { %v680_v6 = vadd.f32 %v1008_v42, %v679_v5 }
 0x24b   : > { %700 = vst [vmem:[%s1316_s28 + $0x68] sm:$0xff] %v680_v6 }
 0x250   : > { %v682_v7 = vpop.f32.mrf.mxu3 }
 0x251   : > { %v683_v8 = vadd.f32 %v1008_v42, %v682_v7 }
 0x253   : > { %701 = vst [vmem:[%s1316_s28 + $0x70] sm:$0xff] %v683_v8 }
 0x258   : > { %v684_v9 = vpop.f32.mrf.mxu3 }
 0x259   : > { %v685_v10 = vadd.f32 %v1008_v42, %v684_v9 }
 0x25b   : > { %702 = vst [vmem:[%s1316_s28 + $0x78] sm:$0xff] %v685_v10 }
 0x25c   : > { %1066 = shalt.err (!%p1063_p4)
}
 0x25d   : > { %s1109_s18 = smov 128   ;;  %s1110_s28 = smov 8  }
 0x25e   : > { %959 = dma.vmem_to_hbm [thread:$0]  (%p1196_p11), %s717_s26, 2048, %s719_s13, %s704_s12, %s1109_s18, %s1109_s18, %s1110_s28  }
 0x25f PF: > { %s733_s29 = sand.u32 1, %s1093_s21   ;;  %p1380_p7 = scmp.ge.s32.totalorder %s1105_s24, 2 }
 0x260   : > { %s734_s17 = scalar_lea.sflag [#allocation4], %s733_s29 }
 0x261   : > { %p966_p5 = pnand %p1380_p7, %p1200_p12 }
 0x263   : > { %p967_p8 = pneg %p966_p5 }
 0x265   : > { %1088 = dma.done.wait (%p967_p8), %s734_s17, 2048  }
 0x266   : > { %1090 = vsyncadd (%p967_p8), %s734_s17, 4294965248  ;;  %p19_p10 = scmp.ge.s32.totalorder %s1171_s27, 4   ;;  %s1381_s21 = smov %s1097_s22 }
 0x267   : > { %s1382_s22 = smov %s1101_s23  ;;  %s1383_s23 = smov %s1183_s30 }
 0x268   : > { %s1384_s24 = smov %s1171_s27  ;;  %21 = sbr.rel (!%p19_p10) target bundleno = 5 (0x5), region = 89 }
 0x26d   :  { %740 = vsyncpa [#allocation3], 1 }
 0x26e   :  { %742 = vsyncpa [#allocation3 + $0x1], 1 }
 0x26f   :  { %743 = vsyncpa [#allocation4], 1 }
 0x270   :  { %745 = vsyncpa [#allocation4 + $0x1], 1 }

</bundles_post_ra>
